<compile_context>
chip_gen: v6e
topology: v6e:2x2x1
jax: 0.10.0
libtpu: 0.0.40
codegen_flags: <defaults>
</compile_context>

<pallas_src>
import functools

import jax
import jax.numpy as jnp
from jax.experimental import pallas as pl
from jax.experimental.pallas import tpu as pltpu

_LANE = 128
_MIB = 1024 * 1024


def _round_up(x, m):
    return (x + m - 1) // m * m


def _seq_align(itemsize):
    # Packed sublanes per vreg: f32 -> 8 rows, bf16 -> 16, int8/fp8 -> 32.
    return 8 * max(1, 4 // itemsize)


def _pick_ts(budget_bytes, seq_len, hidden, itemsize, align, tb):
    """Largest aligned seq tile whose double-buffered stream fits the budget."""
    per_row = 2 * tb * hidden * itemsize          # 2 = double buffering
    max_rows = max(budget_bytes // per_row, align)
    ts = min(_round_up(seq_len, align), (max_rows // align) * align)
    return max(int(ts), align)


def _multimodal_head_kernel(hub_ref, bert_ref, wa_ref, wb_ref, out_ref,
                            acc_a, acc_b, *,
                            n_a_tiles, n_b_tiles, n_seq_per_core,
                            inv_sa, inv_sb):
    cs = pl.program_id(0)          # core-split index (sequence-range shard)
    s = pl.program_id(2)           # local seq-tile index within this shard
    g = cs * n_seq_per_core + s    # global seq-tile index

    @pl.when(s == 0)
    def _init():
        acc_a[...] = jnp.zeros_like(acc_a)
        acc_b[...] = jnp.zeros_like(acc_b)

    # Pooling-sum of one [TB, TS, H] tile, done as a batched MXU matmul
    # against a ones vector (native-dtype inputs, f32 accumulation): no f32
    # copy of the streamed block is materialized and the VPU stays free.
    # Zero-padded rows contribute nothing to the sum.
    @pl.when(g < n_a_tiles)
    def _acc_audio():
        blk = hub_ref[...]
        ones = jnp.ones((blk.shape[0], 1, blk.shape[1]), blk.dtype)
        acc_a[...] += jnp.einsum('bqs,bsh->bqh', ones, blk,
                                 preferred_element_type=jnp.float32)

    @pl.when(g < n_b_tiles)
    def _acc_text():
        blk = bert_ref[...]
        ones = jnp.ones((blk.shape[0], 1, blk.shape[1]), blk.dtype)
        acc_b[...] += jnp.einsum('bqs,bsh->bqh', ones, blk,
                                 preferred_element_type=jnp.float32)

    # Epilogue (once per (core-shard, batch tile)): mean -> split-W Linear.
    # concat(a, b) @ W == a @ W_a + b @ W_b, so no in-kernel concat is needed.
    # Partial (per-core-shard) logits are linear in the partial sums; the
    # cross-shard add + bias is a trivial wrapper-side op.
    @pl.when(s == pl.num_programs(2) - 1)
    def _finalize():
        mean_a = acc_a[...][:, 0, :] * inv_sa
        mean_b = acc_b[...][:, 0, :] * inv_sb
        out_ref[0] = (
            jnp.dot(mean_a, wa_ref[...], preferred_element_type=jnp.float32)
            + jnp.dot(mean_b, wb_ref[...], preferred_element_type=jnp.float32))


def multimodal_head(hubert_hidden, bert_hidden, w_full, bias):
    """logits = Linear(concat([hubert_hidden.mean(1), bert_hidden.mean(1)], -1)).

    hubert_hidden: [B, Sa, Ha]   (bf16 preferred; accumulation is f32)
    bert_hidden:   [B, Sb, Hb]
    w_full:        [Ha + Hb, L]  (transposed nn.Linear weight)
    bias:          [L]
    returns:       [B, L] float32
    """
    B, Sa, Ha = hubert_hidden.shape
    Bb, Sb, Hb = bert_hidden.shape
    assert B == Bb
    L = w_full.shape[1]
    assert w_full.shape[0] == Ha + Hb

    # ---- batch tiling: pad to a multiple of 8 only when B > 8 so tiny batches
    # don't stream redundant zero rows; tb up to 32 for large batches. --------
    if B <= 8:
        b_pad, tb = B, B
    else:
        b_pad = _round_up(B, 8)
        tb = 8
        for cand in (32, 16):
            if b_pad % cand == 0 and b_pad // cand >= 2:
                tb = cand
                break
    n_batch_tiles = b_pad // tb

    # ---- generation-aware VMEM budget ---------------------------------------
    try:
        vmem_physical = int(pltpu.get_tpu_info().vmem_capacity_bytes)
    except Exception:
        vmem_physical = 64 * _MIB  # conservative fallback (v7x per-core VMEM)
    # v5e/v6e (128 MiB physical) -> 64 MiB limit; v7x (64 MiB) -> 52 MiB limit.
    vmem_limit = max(min(vmem_physical - 12 * _MIB, 64 * _MIB), 32 * _MIB)

    l_pad = _round_up(L, _LANE)
    w_bytes = 2 * (Ha + Hb) * l_pad * 4           # resident f32 weights (dbl-buf)
    acc_bytes = tb * 8 * (Ha + Hb) * 4            # f32 accumulators (sublane pad)
    out_bytes = 2 * tb * l_pad * 4                # output blocks (dbl-buf)
    stream_budget = vmem_limit - w_bytes - acc_bytes - out_bytes - 4 * _MIB
    stream_budget = max(stream_budget, 4 * _MIB)

    item_a = hubert_hidden.dtype.itemsize
    item_b = bert_hidden.dtype.itemsize
    align_a = _seq_align(item_a)
    align_b = _seq_align(item_b)

    # ---- per-modality sequence tiles: give the short BERT stream one full-
    # sequence block when it fits; hand the rest to the long HuBERT stream.
    # Otherwise split proportionally to bytes streamed. -----------------------
    bytes_a = Sa * Ha * item_a
    bytes_b = Sb * Hb * item_b
    ts_b_full = _round_up(Sb, align_b)
    full_b_cost = 2 * tb * ts_b_full * Hb * item_b
    prop_b = stream_budget * bytes_b // max(bytes_a + bytes_b, 1)
    if full_b_cost <= max(prop_b, stream_budget // 2):
        ts_b = ts_b_full
        budget_a = stream_budget - full_b_cost
    else:
        ts_b = _pick_ts(prop_b, Sb, Hb, item_b, align_b, tb)
        budget_a = stream_budget - 2 * tb * ts_b * Hb * item_b
    ts_a = _pick_ts(budget_a, Sa, Ha, item_a, align_a, tb)

    # With a single batch tile, force >= 2 HuBERT seq tiles so the sequence
    # range can shard across the two v7x TensorCores (harmless on 1-TC chips).
    if n_batch_tiles == 1:
        half_a = _round_up(max((_round_up(Sa, align_a) + 1) // 2, align_a), align_a)
        if half_a < ts_a:
            ts_a = half_a

    # Zero-pad: padded rows / batch entries contribute nothing (the mean
    # divides by the *true* length; padded logits rows are sliced off).
    def pad3(x, b_to, s_to):
        pb, ps = b_to - x.shape[0], s_to - x.shape[1]
        if pb or ps:
            x = jnp.pad(x, ((0, pb), (0, ps), (0, 0)))
        return x

    hub = pad3(hubert_hidden, b_pad, _round_up(Sa, ts_a))
    brt = pad3(bert_hidden, b_pad, _round_up(Sb, ts_b))
    n_a = hub.shape[1] // ts_a
    n_b = brt.shape[1] // ts_b
    n_seq = max(n_a, n_b)

    ncs = 2 if (n_batch_tiles == 1 and n_seq >= 2) else 1
    n_spc = (n_seq + ncs - 1) // ncs

    # Lane-dense, split classifier weights (fetched once: constant index map).
    w_a = jnp.zeros((Ha, l_pad), jnp.float32).at[:, :L].set(
        w_full[:Ha].astype(jnp.float32))
    w_b = jnp.zeros((Hb, l_pad), jnp.float32).at[:, :L].set(
        w_full[Ha:].astype(jnp.float32))

    kernel = functools.partial(
        _multimodal_head_kernel,
        n_a_tiles=n_a, n_b_tiles=n_b, n_seq_per_core=n_spc,
        inv_sa=1.0 / Sa, inv_sb=1.0 / Sb)

    in_specs = [
        # Hidden-state streams: seq block index clamped for the shorter
        # modality / padding iterations (accumulation is gated by pl.when; an
        # unchanged block index elides the re-fetch).
        pl.BlockSpec((tb, ts_a, Ha),
                     lambda cs, b, s: (b, jnp.minimum(cs * n_spc + s, n_a - 1), 0)),
        pl.BlockSpec((tb, ts_b, Hb),
                     lambda cs, b, s: (b, jnp.minimum(cs * n_spc + s, n_b - 1), 0)),
        # Weights: constant block index -> DMA'd once, kept resident per core.
        pl.BlockSpec((Ha, l_pad), lambda cs, b, s: (0, 0)),
        pl.BlockSpec((Hb, l_pad), lambda cs, b, s: (0, 0)),
    ]
    out_specs = pl.BlockSpec((1, tb, l_pad), lambda cs, b, s: (cs, b, 0))

    cost = pl.CostEstimate(
        flops=int(2 * b_pad * (hub.shape[1] * Ha + brt.shape[1] * Hb)
                  + ncs * 2 * b_pad * (Ha + Hb) * l_pad),
        transcendentals=0,
        bytes_accessed=int(hub.size * item_a + brt.size * item_b
                           + ncs * (w_a.size + w_b.size) * 4
                           + ncs * b_pad * l_pad * 4))

    partial_logits = pl.pallas_call(
        kernel,
        out_shape=jax.ShapeDtypeStruct((ncs, b_pad, l_pad), jnp.float32),
        grid=(ncs, n_batch_tiles, n_spc),
        in_specs=in_specs,
        out_specs=out_specs,
        scratch_shapes=[
            pltpu.VMEM((tb, 1, Ha), jnp.float32),   # audio pooled-sum accumulator
            pltpu.VMEM((tb, 1, Hb), jnp.float32),   # text pooled-sum accumulator
        ],
        compiler_params=pltpu.CompilerParams(
            dimension_semantics=("parallel", "parallel", "arbitrary"),
            vmem_limit_bytes=int(vmem_limit)),
        cost_estimate=cost,
    )(hub, brt, w_a, w_b)

    # Combine core-shard partials (linear), add bias, strip padding.
    logits = partial_logits.sum(axis=0)[:B, :L] + bias.reshape(-1).astype(jnp.float32)
    return logits


if __name__ == "__main__":
    # Small, deterministic synthetic shapes consistent with the forward pass.
    B = 2            # batch
    S_AUDIO = 8      # hubert sequence length (real model: 100s-1000s of frames)
    S_TEXT = 8       # bert sequence length
    H_AUDIO = 32     # hubert hidden size (real model: 768)
    H_TEXT = 32      # bert hidden size   (real model: 768)
    NUM_LABELS = 7

    key = jax.random.PRNGKey(0)
    k_hub, k_bert, k_w, k_b = jax.random.split(key, 4)

    # Synthetic "last hidden states" from the (untranslated) backbones, kept in
    # bf16 in HBM (halves the streamed bytes; accumulation is f32 in-kernel).
    hubert_hidden = jax.random.normal(
        k_hub, (B, S_AUDIO, H_AUDIO), dtype=jnp.float32).astype(jnp.bfloat16)
    bert_hidden = jax.random.normal(
        k_bert, (B, S_TEXT, H_TEXT), dtype=jnp.float32).astype(jnp.bfloat16)

    # Classifier params (nn.Linear(H_AUDIO + H_TEXT, NUM_LABELS)), deterministic.
    fan_in = H_AUDIO + H_TEXT
    bound = 1.0 / (fan_in ** 0.5)
    w_full = jax.random.uniform(
        k_w, (fan_in, NUM_LABELS), minval=-bound, maxval=bound, dtype=jnp.float32)
    bias = jax.random.uniform(
        k_b, (NUM_LABELS,), minval=-bound, maxval=bound, dtype=jnp.float32)

    logits = multimodal_head(hubert_hidden, bert_hidden, w_full, bias)
    logits = jax.block_until_ready(logits)

    # Plain-JAX reference of the same math (f32 accumulation of bf16 inputs).
    hub_mean = hubert_hidden.astype(jnp.float32).mean(axis=1)
    brt_mean = bert_hidden.astype(jnp.float32).mean(axis=1)
    ref = jnp.concatenate([hub_mean, brt_mean], axis=-1) @ w_full + bias

    assert logits.shape == (B, NUM_LABELS)
    assert jnp.allclose(logits, ref, atol=1e-4, rtol=1e-4)

    print("KERNEL_OK")
</pallas_src>

<mosaic_0001>
module attributes {stable_mosaic.version = 11 : i64} {
  func.func @_multimodal_head_kernel(%arg0: i32, %arg1: i32, %arg2: i32, %arg3: memref<2x16x32xbf16, #tpu.memory_space<vmem>>, %arg4: memref<2x16x32xbf16, #tpu.memory_space<vmem>>, %arg5: memref<32x128xf32, #tpu.memory_space<vmem>>, %arg6: memref<32x128xf32, #tpu.memory_space<vmem>>, %arg7: memref<1x2x128xf32, #tpu.memory_space<vmem>>, %arg8: memref<2x1x32xf32, #tpu.memory_space<vmem>>, %arg9: memref<2x1x32xf32, #tpu.memory_space<vmem>>) attributes {dimension_semantics = [#tpu.dimension_semantics<parallel>, #tpu.dimension_semantics<parallel>, #tpu.dimension_semantics<arbitrary>], iteration_bounds = array<i64: 1, 1, 1>, scalar_prefetch = 0 : i64, scratch_operands = 2 : i64, tpu.core_type = #tpu.core_type<tc>, window_params = [{transform_indices = @transform_0, window_bounds = array<i64: 2, 16, 32>}, {transform_indices = @transform_1, window_bounds = array<i64: 2, 16, 32>}, {pipeline_mode = #tpu.pipeline_mode<synchronous>, transform_indices = @transform_2, window_bounds = array<i64: 32, 128>}, {pipeline_mode = #tpu.pipeline_mode<synchronous>, transform_indices = @transform_3, window_bounds = array<i64: 32, 128>}, {transform_indices = @transform_4, window_bounds = array<i64: 1, 2, 128>}]} {
    %c1_i32 = arith.constant 1 : i32
    %0 = arith.muli %arg0, %c1_i32 : i32
    %1 = arith.addi %0, %arg2 : i32
    %c0_i32 = arith.constant 0 : i32
    %2 = arith.cmpi eq, %arg2, %c0_i32 : i32
    %3 = arith.extui %2 : i1 to i32
    %c0_i32_0 = arith.constant 0 : i32
    %4 = arith.cmpi ne, %3, %c0_i32_0 : i32
    scf.if %4 {
      %cst = arith.constant 0.000000e+00 : f32
      %14 = vector.broadcast %cst : f32 to vector<2x1x32xf32>
      %c0 = arith.constant 0 : index
      %c0_7 = arith.constant 0 : index
      %c0_8 = arith.constant 0 : index
      %15 = vector.load %arg8[%c0, %c0_7, %c0_8] : memref<2x1x32xf32, #tpu.memory_space<vmem>>, vector<2x1x32xf32>
      tpu.vector_store %arg8[%c0, %c0_7, %c0_8], %14 {strides = array<i32>} : memref<2x1x32xf32, #tpu.memory_space<vmem>>, vector<2x1x32xf32>,
      %cst_9 = arith.constant 0.000000e+00 : f32
      %16 = vector.broadcast %cst_9 : f32 to vector<2x1x32xf32>
      %c0_10 = arith.constant 0 : index
      %c0_11 = arith.constant 0 : index
      %c0_12 = arith.constant 0 : index
      %17 = vector.load %arg9[%c0_10, %c0_11, %c0_12] : memref<2x1x32xf32, #tpu.memory_space<vmem>>, vector<2x1x32xf32>
      tpu.vector_store %arg9[%c0_10, %c0_11, %c0_12], %16 {strides = array<i32>} : memref<2x1x32xf32, #tpu.memory_space<vmem>>, vector<2x1x32xf32>,
    } else {
    }
    %c1_i32_1 = arith.constant 1 : i32
    %5 = arith.cmpi slt, %1, %c1_i32_1 : i32
    %6 = arith.extui %5 : i1 to i32
    %c0_i32_2 = arith.constant 0 : i32
    %7 = arith.cmpi ne, %6, %c0_i32_2 : i32
    scf.if %7 {
      %c0 = arith.constant 0 : index
      %c0_7 = arith.constant 0 : index
      %c0_8 = arith.constant 0 : index
      %14 = vector.load %arg3[%c0, %c0_7, %c0_8] : memref<2x16x32xbf16, #tpu.memory_space<vmem>>, vector<2x16x32xbf16>
      %cst = arith.constant 1.000000e+00 : bf16
      %15 = vector.broadcast %cst : bf16 to vector<2x1x16xbf16>
      %c0_9 = arith.constant 0 : index
      %c0_10 = arith.constant 0 : index
      %c0_11 = arith.constant 0 : index
      %16 = vector.load %arg8[%c0_9, %c0_10, %c0_11] : memref<2x1x32xf32, #tpu.memory_space<vmem>>, vector<2x1x32xf32>
      "tpu.trace_start"() <{level = 10 : i32, message = "bqs,bsh->bqh"}> : () -> ()
      %cst_12 = arith.constant dense<0.000000e+00> : vector<2x1x32xf32>
      %17 = tpu.matmul %15, %14, %cst_12 {dimension_numbers = #tpu.dot_dimension_numbers<[2], [1], [1], [2], [0, 0, 0, 1, 1, 2], [0], [0]>} : vector<2x1x16xbf16>, vector<2x16x32xbf16>, vector<2x1x32xf32> -> vector<2x1x32xf32>
      "tpu.trace_stop"() : () -> ()
      %18 = arith.addf %16, %17 : vector<2x1x32xf32>
      %c0_13 = arith.constant 0 : index
      %c0_14 = arith.constant 0 : index
      %c0_15 = arith.constant 0 : index
      %19 = vector.load %arg8[%c0_13, %c0_14, %c0_15] : memref<2x1x32xf32, #tpu.memory_space<vmem>>, vector<2x1x32xf32>
      tpu.vector_store %arg8[%c0_13, %c0_14, %c0_15], %18 {strides = array<i32>} : memref<2x1x32xf32, #tpu.memory_space<vmem>>, vector<2x1x32xf32>,
    } else {
    }
    %c1_i32_3 = arith.constant 1 : i32
    %8 = arith.cmpi slt, %1, %c1_i32_3 : i32
    %9 = arith.extui %8 : i1 to i32
    %c0_i32_4 = arith.constant 0 : i32
    %10 = arith.cmpi ne, %9, %c0_i32_4 : i32
    scf.if %10 {
      %c0 = arith.constant 0 : index
      %c0_7 = arith.constant 0 : index
      %c0_8 = arith.constant 0 : index
      %14 = vector.load %arg4[%c0, %c0_7, %c0_8] : memref<2x16x32xbf16, #tpu.memory_space<vmem>>, vector<2x16x32xbf16>
      %cst = arith.constant 1.000000e+00 : bf16
      %15 = vector.broadcast %cst : bf16 to vector<2x1x16xbf16>
      %c0_9 = arith.constant 0 : index
      %c0_10 = arith.constant 0 : index
      %c0_11 = arith.constant 0 : index
      %16 = vector.load %arg9[%c0_9, %c0_10, %c0_11] : memref<2x1x32xf32, #tpu.memory_space<vmem>>, vector<2x1x32xf32>
      "tpu.trace_start"() <{level = 10 : i32, message = "bqs,bsh->bqh"}> : () -> ()
      %cst_12 = arith.constant dense<0.000000e+00> : vector<2x1x32xf32>
      %17 = tpu.matmul %15, %14, %cst_12 {dimension_numbers = #tpu.dot_dimension_numbers<[2], [1], [1], [2], [0, 0, 0, 1, 1, 2], [0], [0]>} : vector<2x1x16xbf16>, vector<2x16x32xbf16>, vector<2x1x32xf32> -> vector<2x1x32xf32>
      "tpu.trace_stop"() : () -> ()
      %18 = arith.addf %16, %17 : vector<2x1x32xf32>
      %c0_13 = arith.constant 0 : index
      %c0_14 = arith.constant 0 : index
      %c0_15 = arith.constant 0 : index
      %19 = vector.load %arg9[%c0_13, %c0_14, %c0_15] : memref<2x1x32xf32, #tpu.memory_space<vmem>>, vector<2x1x32xf32>
      tpu.vector_store %arg9[%c0_13, %c0_14, %c0_15], %18 {strides = array<i32>} : memref<2x1x32xf32, #tpu.memory_space<vmem>>, vector<2x1x32xf32>,
    } else {
    }
    %c0_i32_5 = arith.constant 0 : i32
    %11 = arith.cmpi eq, %arg2, %c0_i32_5 : i32
    %12 = arith.extui %11 : i1 to i32
    %c0_i32_6 = arith.constant 0 : i32
    %13 = arith.cmpi ne, %12, %c0_i32_6 : i32
    scf.if %13 {
      %c0 = arith.constant 0 : index
      %c0_7 = arith.constant 0 : index
      %c0_8 = arith.constant 0 : index
      %14 = vector.load %arg8[%c0, %c0_7, %c0_8] : memref<2x1x32xf32, #tpu.memory_space<vmem>>, vector<2x1x32xf32>
      %15 = vector.shape_cast %14 : vector<2x1x32xf32> to vector<2x32xf32>
      %cst = arith.constant 1.250000e-01 : f32
      %16 = vector.broadcast %cst : f32 to vector<2x32xf32>
      %17 = arith.mulf %15, %16 : vector<2x32xf32>
      %c0_9 = arith.constant 0 : index
      %c0_10 = arith.constant 0 : index
      %c0_11 = arith.constant 0 : index
      %18 = vector.load %arg9[%c0_9, %c0_10, %c0_11] : memref<2x1x32xf32, #tpu.memory_space<vmem>>, vector<2x1x32xf32>
      %19 = vector.shape_cast %18 : vector<2x1x32xf32> to vector<2x32xf32>
      %cst_12 = arith.constant 1.250000e-01 : f32
      %20 = vector.broadcast %cst_12 : f32 to vector<2x32xf32>
      %21 = arith.mulf %19, %20 : vector<2x32xf32>
      %c0_13 = arith.constant 0 : index
      %c0_14 = arith.constant 0 : index
      %22 = vector.load %arg5[%c0_13, %c0_14] : memref<32x128xf32, #tpu.memory_space<vmem>>, vector<32x128xf32>
      %cst_15 = arith.constant dense<0.000000e+00> : vector<2x128xf32>
      %23 = tpu.matmul %17, %22, %cst_15 {dimension_numbers = #tpu.dot_dimension_numbers<[1], [0], [0], [1], [0, 0, 1, 1], [], []>} : vector<2x32xf32>, vector<32x128xf32>, vector<2x128xf32> -> vector<2x128xf32>
      %c0_16 = arith.constant 0 : index
      %c0_17 = arith.constant 0 : index
      %24 = vector.load %arg6[%c0_16, %c0_17] : memref<32x128xf32, #tpu.memory_space<vmem>>, vector<32x128xf32>
      %cst_18 = arith.constant dense<0.000000e+00> : vector<2x128xf32>
      %25 = tpu.matmul %21, %24, %cst_18 {dimension_numbers = #tpu.dot_dimension_numbers<[1], [0], [0], [1], [0, 0, 1, 1], [], []>} : vector<2x32xf32>, vector<32x128xf32>, vector<2x128xf32> -> vector<2x128xf32>
      %26 = arith.addf %23, %25 : vector<2x128xf32>
      %c0_19 = arith.constant 0 : index
      %c0_20 = arith.constant 0 : index
      %c0_21 = arith.constant 0 : index
      %27 = vector.load %arg7[%c0_19, %c0_20, %c0_21] : memref<1x2x128xf32, #tpu.memory_space<vmem>>, vector<1x2x128xf32>
      %28 = vector.shape_cast %27 : vector<1x2x128xf32> to vector<2x128xf32>
      %29 = vector.shape_cast %26 : vector<2x128xf32> to vector<1x2x128xf32>
      tpu.vector_store %arg7[%c0_19, %c0_20, %c0_21], %29 {strides = array<i32>} : memref<1x2x128xf32, #tpu.memory_space<vmem>>, vector<1x2x128xf32>,
    } else {
    }
    return
  }
  func.func @transform_0(%arg0: i32, %arg1: i32, %arg2: i32) -> (i32, i32, i32) {
    %c1_i32 = arith.constant 1 : i32
    %0 = arith.muli %arg0, %c1_i32 : i32
    %1 = arith.addi %0, %arg2 : i32
    %c0_i32 = arith.constant 0 : i32
    %2 = arith.minsi %1, %c0_i32 : i32
    %c0_i32_0 = arith.constant 0 : i32
    %c0_i32_1 = arith.constant 0 : i32
    return %arg1, %2, %c0_i32_0 : i32, i32, i32
  }
  func.func @transform_1(%arg0: i32, %arg1: i32, %arg2: i32) -> (i32, i32, i32) {
    %c1_i32 = arith.constant 1 : i32
    %0 = arith.muli %arg0, %c1_i32 : i32
    %1 = arith.addi %0, %arg2 : i32
    %c0_i32 = arith.constant 0 : i32
    %2 = arith.minsi %1, %c0_i32 : i32
    %c0_i32_0 = arith.constant 0 : i32
    %c0_i32_1 = arith.constant 0 : i32
    return %arg1, %2, %c0_i32_0 : i32, i32, i32
  }
  func.func @transform_2(%arg0: i32, %arg1: i32, %arg2: i32) -> (i32, i32) {
    %c0_i32 = arith.constant 0 : i32
    %c0_i32_0 = arith.constant 0 : i32
    %c0_i32_1 = arith.constant 0 : i32
    return %c0_i32, %c0_i32_0 : i32, i32
  }
  func.func @transform_3(%arg0: i32, %arg1: i32, %arg2: i32) -> (i32, i32) {
    %c0_i32 = arith.constant 0 : i32
    %c0_i32_0 = arith.constant 0 : i32
    %c0_i32_1 = arith.constant 0 : i32
    return %c0_i32, %c0_i32_0 : i32, i32
  }
  func.func @transform_4(%arg0: i32, %arg1: i32, %arg2: i32) -> (i32, i32, i32) {
    %c0_i32 = arith.constant 0 : i32
    %c0_i32_0 = arith.constant 0 : i32
    return %arg0, %arg1, %c0_i32 : i32, i32, i32
  }
}

</mosaic_0001>

<bundles_post_ra>
// kernel: tpu_custom_call.1
= control target key start
LH: loop header
LB: loop body
LE: loop exit
PB: predicated region body
PF: predicated region fallthrough
CT: control target
= control target key end

     0   :  { %9 = vsyncpa [#allocation5], 0  ;;  %s808_s0 = inlined_call_operand.hbm [shape: bf16[2,16,32], index: 0, kind: input, shape index: {}]   ;;  %s809_s1 = inlined_call_operand.hbm [shape: bf16[2,16,32], index: 1, kind: input, shape index: {}]   ;;  %s810_s2 = inlined_call_operand.hbm [shape: f32[32,128], index: 2, kind: input, shape index: {}]   ;;  %s811_s3 = inlined_call_operand.hbm [shape: f32[32,128], index: 3, kind: input, shape index: {}]   ;;  %s812_s4 = inlined_call_operand.hbm [shape: f32[1,2,128], index: 4, kind: output, shape index: {}]  }
   0x1   :  { %10 = vsyncpa [#allocation8], 0 }
   0x2   :  { %11 = vsyncpa [#allocation11], 0 }
   0x3   :  { %12 = vsyncpa [#allocation6], 0  ;;  %s737_s15 = smov [#allocation7]   ;;  %s738_s17 = smov [#allocation4]  }
   0x4   :  { %s42_s16 = sshll.u32 %s737_s15, 4  ;;  %s24_s18 = sshll.u32 %s738_s17, 4  ;;  %s43_s16 = int_to_ptr.vmem [resolvable:$true] %s42_s16  ;;  %s25_s18 = int_to_ptr.vmem [resolvable:$true] %s24_s18 }
   0x5   :  { %s637_s19 = scalar_lea.vmem %s43_s16, 256  ;;  %p642_p1 = scmp.lt.s32.totalorder %s43_s16, %s43_s16 }
   0x6   :  { %p638_p0 = scmp.ne.s32.totalorder %s43_s16, %s637_s19  ;;  %p643_p2 = scmp.lt.s32.totalorder %s637_s19, %s637_s19 }
   0x8   :  { %p644_p3 = por %p643_p2, %p642_p1 }
   0xa   :  { %p645_p4 = pnand %p644_p3, %p638_p0 }
   0xc   :  { %648 = shalt.err (!%p645_p4)
}
   0xd   :  { %s739_s20 = smov 64   ;;  %s740_s21 = smov 4  }
   0xe   :  { %48 = dma.hbm_to_vmem [thread:$0]  %s809_s1, 256, %s43_s16, [#allocation8], %s739_s20, %s739_s20, %s740_s21  }
   0xf   :  { %s657_s24 = scalar_lea.vmem %s25_s18, 256  ;;  %p662_p6 = scmp.lt.s32.totalorder %s25_s18, %s25_s18 }
  0x10   :  { %p658_p5 = scmp.ne.s32.totalorder %s25_s18, %s657_s24  ;;  %p663_p7 = scmp.lt.s32.totalorder %s657_s24, %s657_s24 }
  0x12   :  { %p664_p8 = por %p663_p7, %p662_p6 }
  0x14   :  { %p665_p9 = pnand %p664_p8, %p658_p5 }
  0x16   :  { %668 = shalt.err (!%p665_p9)
}
  0x17   :  { %30 = dma.hbm_to_vmem [thread:$0]  %s808_s0, 256, %s25_s18, [#allocation5], %s739_s20, %s739_s20, %s740_s21  }
  0x18   :  { %s741_s27 = smov [#allocation9]  }
  0x19   :  { %s54_s28 = sshll.u32 %s741_s27, 4  ;;  %s55_s28 = int_to_ptr.vmem [resolvable:$true] %s54_s28 }
  0x1a   :  { %s677_s29 = scalar_lea.vmem %s55_s28, 512  ;;  %p682_p11 = scmp.lt.s32.totalorder %s55_s28, %s55_s28 }
  0x1b   :  { %p678_p10 = scmp.ne.s32.totalorder %s55_s28, %s677_s29  ;;  %p683_p12 = scmp.lt.s32.totalorder %s677_s29, %s677_s29 }
  0x1d   :  { %p684_p13 = por %p683_p12, %p682_p11 }
  0x1f   :  { %p685_p0 = pnand %p684_p13, %p678_p10 }
  0x21   :  { %688 = shalt.err (!%p685_p0)
}
  0x22   :  { %s742_s1 = smov 128   ;;  %s743_s30 = smov 8  }
  0x23   :  { %60 = dma.hbm_to_vmem [thread:$0]  %s810_s2, 512, %s55_s28, [#allocation8], %s742_s1, %s742_s1, %s743_s30  }
  0x24   :  { %s744_s7 = smov [#allocation10]  }
  0x25   :  { %s66_s8 = sshll.u32 %s744_s7, 4  ;;  %s67_s8 = int_to_ptr.vmem [resolvable:$true] %s66_s8 }
  0x26   :  { %s697_s0 = scalar_lea.vmem %s67_s8, 512  ;;  %p702_p2 = scmp.lt.s32.totalorder %s67_s8, %s67_s8 }
  0x27   :  { %p698_p1 = scmp.ne.s32.totalorder %s67_s8, %s697_s0  ;;  %p703_p3 = scmp.lt.s32.totalorder %s697_s0, %s697_s0 }
  0x29   :  { %p704_p4 = por %p703_p3, %p702_p2 }
  0x2b   :  { %p705_p5 = pnand %p704_p4, %p698_p1 }
  0x2d   :  { %708 = shalt.err (!%p705_p5)
}
  0x2e   :  { %72 = dma.hbm_to_vmem [thread:$0]  %s811_s3, 512, %s67_s8, [#allocation11], %s742_s1, %s742_s1, %s743_s30  }
  0x2f   :  { %729 = dma.done.wait [#allocation5], 256  }
  0x30   :  { %730 = vsyncadd [#allocation5], 4294967040 }
  0x31   :  { %731 = dma.done.wait [#allocation8], 768  }
  0x32   :  { %732 = vsyncadd [#allocation8], 4294966528 }
  0x33   :  { %733 = dma.done.wait [#allocation11], 512  }
  0x34   :  { %734 = vsyncadd [#allocation11], 4294966784  ;;  %vm100_vm0 = vcmask 253952   ;;  %v745_v0 = vmov 0.0   ;;  %vm746_vm1 = vmmov 0   ;;  %v625_v1 = vld [vmem:[#allocation4] sm:$0xff]   ;;  %v343_v25 = vlaneseq }
  0x35   :  { %566 = vmatprep.subr.bf16.mxu0 %v745_v0  ;;  %572 = vmatprep.subr.bf16.mxu1 %v745_v0  ;;  %101 = vst.msk [vmem:[#allocation2] sm:$0x1] %vm100_vm0, %v745_v0  ;;  %102 = vst.msk [vmem:[#allocation2 + $0x1] sm:$0x1] %vm100_vm0, %v745_v0  ;;  %v626_v2 = vld [vmem:[#allocation4 + $0x8] sm:$0xff]   ;;  %vm121_vm2 = vcmask 130048  }
  0x36   :  { %103 = vst.msk [vmem:[#allocation3] sm:$0x1] %vm100_vm0, %v745_v0  ;;  %104 = vst.msk [vmem:[#allocation3 + $0x1] sm:$0x1] %vm100_vm0, %v745_v0  ;;  %568 = vmatprep.mubr.msk.bf16.mxu0 %vm746_vm1, %v745_v0  ;;  %574 = vmatprep.mubr.msk.bf16.mxu1 %vm746_vm1, %v745_v0  ;;  %v627_v3 = vld [vmem:[#allocation7] sm:$0xff]   ;;  %v628_v4 = vld [vmem:[#allocation7 + $0x8] sm:$0xff]  }
  0x37   :  { %567 = vmatpush3.bf16.msra.mxu0 %v625_v1  ;;  %573 = vmatpush3.bf16.msra.mxu1 %v626_v2  ;;  %v747_v5 = vmov 1065369472   ;;  %v332_v6 = vld [vmem:[#allocation9 + $0x18] sm:$0xff]  ;;  %v331_v7 = vld [vmem:[#allocation9 + $0x10] sm:$0xff]  ;;  %v330_v8 = vld [vmem:[#allocation9 + $0x8] sm:$0xff]  ;;  %v344_v33 = vshrl.u32 %v343_v25, 7 }
  0x38   :  { %578 = vmatprep.subr.bf16.mxu0 %v745_v0  ;;  %584 = vmatprep.subr.bf16.mxu1 %v745_v0  ;;  %v329_v9 = vld [vmem:[#allocation9] sm:$0xff]  ;;  %v336_v10 = vld [vmem:[#allocation10 + $0x18] sm:$0xff]  ;;  %v335_v11 = vld [vmem:[#allocation10 + $0x10] sm:$0xff]  ;;  %v748_v23 = vmov 1966171168   ;;  %vm354_vm3 = vcmask 261120  }
  0x39   :  { %v334_v12 = vld [vmem:[#allocation10 + $0x8] sm:$0xff]  ;;  %v333_v13 = vld [vmem:[#allocation10] sm:$0xff]  ;;  %v341_v24 = vunpack.c.l.s4 %v748_v23  ;;  %s749_s2 = smov [#allocation12]  }
  0x3a   :  { %569 = vmatmul.mubr.msk.bf16.vlgmr.msra.gmra.mxu0 %vm121_vm2, %v747_v5  ;;  %575 = vmatmul.mubr.msk.bf16.vlgmr.msra.gmra.mxu1 %vm121_vm2, %v747_v5  ;;  %s523_s3 = sshll.u32 %s749_s2, 4  ;;  %s524_s3 = int_to_ptr.vmem [resolvable:$true] %s523_s3 }
  0x3b   :  { %579 = vmatpush3.bf16.msra.mxu0 %v627_v3  ;;  %585 = vmatpush3.bf16.msra.mxu1 %v628_v4  ;;  %v342_v32 = vunpack.c.0.s8 %v341_v24  ;;  %s709_s11 = scalar_lea.vmem %s524_s3, 32  ;;  %p714_p7 = scmp.lt.s32.totalorder %s524_s3, %s524_s3 }
  0x3c   :  { %580 = vmatprep.mubr.msk.bf16.mxu0 %vm746_vm1, %v745_v0  ;;  %586 = vmatprep.mubr.msk.bf16.mxu1 %vm746_vm1, %v745_v0  ;;  %v113_v14 = vld [vmem:[#allocation2] sm:$0x1]  ;;  %v114_v15 = vld [vmem:[#allocation2 + $0x1] sm:$0x1]  ;;  %p710_p6 = scmp.ne.s32.totalorder %s524_s3, %s709_s11  ;;  %p715_p8 = scmp.lt.s32.totalorder %s709_s11, %s709_s11 }
  0x3d   :  { %601 = vmatprep.subr.mxu1 %v745_v0  ;;  %590 = vmatprep.subr.mxu0 %v745_v0  ;;  %v220_v28 = vld [vmem:[#allocation3] sm:$0x1]  ;;  %v221_v30 = vld [vmem:[#allocation3 + $0x1] sm:$0x1]  ;;  %v345_v44 = vsub.s32 %v342_v32, %v344_v33 }
  0x3e   :  { %p716_p9 = por %p715_p8, %p714_p7 }
  0x40   :  { %p717_p10 = pnand %p716_p9, %p710_p6 }
  0x42   :  { %581 = vmatmul.mubr.msk.bf16.vlgmr.msra.gmra.mxu0 %vm121_vm2, %v747_v5  ;;  %587 = vmatmul.mubr.msk.bf16.vlgmr.msra.gmra.mxu1 %vm121_vm2, %v747_v5 }
  0x43   :  { %598 = vmatprep.mubr.msk.f32.mxu0 %vm746_vm1, %v745_v0  ;;  %609 = vmatprep.mubr.msk.f32.mxu1 %vm746_vm1, %v745_v0 }
  0x44   :  { %602 = vmatpush3.msra.mxu1 %v332_v6  ;;  %591 = vmatpush3.msra.mxu0 %v336_v10 }
  0x45   :  { %603 = vmatprep.subr.mxu1 %v745_v0  ;;  %592 = vmatprep.subr.mxu0 %v745_v0 }
  0x46   :  { %604 = vmatpush3.msra.mxu1 %v331_v7  ;;  %593 = vmatpush3.msra.mxu0 %v335_v11 }
  0x47   :  { %605 = vmatprep.subr.mxu1 %v745_v0  ;;  %594 = vmatprep.subr.mxu0 %v745_v0 }
  0x48   :  { %606 = vmatpush3.msra.mxu1 %v330_v8  ;;  %595 = vmatpush3.msra.mxu0 %v334_v12 }
  0x49   :  { %607 = vmatprep.subr.mxu1 %v745_v0  ;;  %596 = vmatprep.subr.mxu0 %v745_v0 }
  0x4a   :  { %608 = vmatpush3.msra.mxu1 %v329_v9  ;;  %597 = vmatpush3.msra.mxu0 %v333_v13 }
  0xfa   :  { %v159_v16 = vpop.f32.mrf.mxu0  ;;  %v205_v18 = vpop.f32.mrf.mxu1 }
  0xfb   :  { %v211_v17 = vadd.f32 %v159_v16, %v113_v14  ;;  %v212_v19 = vadd.f32 %v205_v18, %v114_v15 }
  0xfc   :  { %v570_v20 = vpop.f32.mrf.mxu0  ;;  %v576_v21 = vpop.f32.mrf.mxu1 }
  0xfd   :  { %214 = vst.msk [vmem:[#allocation2] sm:$0x1] %vm100_vm0, %v211_v17  ;;  %215 = vst.msk [vmem:[#allocation2 + $0x1] sm:$0x1] %vm100_vm0, %v212_v19 }
  0xfe   :  { %v162_v22 = vpop.f32.mrf.mxu0  ;;  %v208_v26 = vpop.f32.mrf.mxu1 }
 0x100   :  { %v571_v27 = vpop.f32.mrf.mxu0  ;;  %v577_v29 = vpop.f32.mrf.mxu1 }
 0x102   :  { %v262_v31 = vpop.f32.mrf.mxu0  ;;  %v308_v35 = vpop.f32.mrf.mxu1 }
 0x103   :  { %v314_v34 = vadd.f32 %v262_v31, %v220_v28  ;;  %v315_v36 = vadd.f32 %v308_v35, %v221_v30 }
 0x104   :  { %v582_v37 = vpop.f32.mrf.mxu0  ;;  %v321_v38 = vld [vmem:[#allocation2] sm:$0x1]  ;;  %v588_v39 = vpop.f32.mrf.mxu1  ;;  %v322_v40 = vld [vmem:[#allocation2 + $0x1] sm:$0x1] }
 0x105   :  { %316 = vst.msk [vmem:[#allocation3] sm:$0x1] %vm100_vm0, %v314_v34  ;;  %v323_v41 = vmul.f32 0.125, %v321_v38  ;;  %317 = vst.msk [vmem:[#allocation3 + $0x1] sm:$0x1] %vm100_vm0, %v315_v36  ;;  %v324_v43 = vmul.f32 0.125, %v322_v40 }
 0x106   :  { %v265_v42 = vpop.f32.mrf.mxu0  ;;  %v311_v45 = vpop.f32.mrf.mxu1 }
 0x107   :  { %v429_v47 = vcombine.low %v323_v41, %v324_v43 }
 0x108   :  { %v583_v46 = vpop.f32.mrf.mxu0  ;;  %v589_v48 = vpop.f32.mrf.mxu1 }
 0x109   :  { %v436_v49 = vrot.slane %v429_v47, %v345_v44 }
 0x10b   :  { %v443_v50 = vrot.slane %v436_v49, %v345_v44 }
 0x10c   :  { %v325_v51 = vld [vmem:[#allocation3] sm:$0x1]  ;;  %v326_v52 = vld [vmem:[#allocation3 + $0x1] sm:$0x1] }
 0x10d   :  { %v327_v53 = vmul.f32 0.125, %v325_v51  ;;  %610 = vmatmul.mubr.msk.f32.vlgmr.msra.gmra.mxu1 %vm354_vm3, %v443_v50  ;;  %v328_v54 = vmul.f32 0.125, %v326_v52 }
 0x10f   :  { %v339_v55 = vcombine.low %v327_v53, %v328_v54 }
 0x111   :  { %v346_v56 = vrot.slane %v339_v55, %v345_v44 }
 0x113   :  { %v353_v57 = vrot.slane %v346_v56, %v345_v44 }
 0x115   :  { %599 = vmatmul.mubr.msk.f32.vlgmr.msra.gmra.mxu0 %vm354_vm3, %v353_v57 }
 0x1cd   :  { %v512_v58 = vpop.f32.mrf.mxu1 }
 0x1cf   :  { %v611_v59 = vpop.f32.mrf.mxu1 }
 0x1d5   :  { %v423_v60 = vpop.f32.mrf.mxu0 }
 0x1d6   :  { %v513_v61 = vadd.f32 %v512_v58, %v423_v60 }
 0x1d7   :  { %v600_v62 = vpop.f32.mrf.mxu0 }
 0x1d8   :  { %516 = vst [vmem:[#allocation12] sm:$0x3] %v513_v61 }
 0x1d9   :  { %720 = shalt.err (!%p717_p10)
}
 0x1da   :  { %526 = dma.vmem_to_hbm [thread:$0]  %s524_s3, 32, %s812_s4, [#allocation6]  }
 0x1db   :  { %735 = dma.done.wait [#allocation6], 32  }
 0x1dc   :  { %736 = vsyncadd [#allocation6], 4294967264 }
 0x1dd   :  { %530 = vsyncpa [#allocation5], 1 }
 0x1de   :  { %531 = vsyncpa [#allocation8], 1 }
 0x1df   :  { %532 = vsyncpa [#allocation11], 1 }
 0x1e0   :  { %533 = vsyncpa [#allocation6], 1 }

</bundles_post_ra>
